<compile_context>
chip_gen: v7x
topology: tpu7x:2x2x1
jax: 0.10.0
libtpu: 0.0.40
codegen_flags: <defaults>
</compile_context>

<pallas_src>
import jax
import jax.numpy as jnp
from jax.experimental import pallas as pl
from jax.experimental.pallas import tpu as pltpu

HIDDEN = 2 ** 7   # 128
IN_DIM = 2
OUT_DIM = 3


def _round_up(n, m):
    return ((n + m - 1) // m) * m


def _make_mlp_kernel(bf16_tanh):
    """Kernel factory; `bf16_tanh` is a static Python flag."""

    def kernel(x_ref, w1_ref, b1_ref, w2_ref, b2_ref, w3_ref, b3_ref, o_ref):
        xt = x_ref[...]                                   # [2, TILE_B]  f32
        w1 = w1_ref[...]                                  # [128, 2]     f32

        # fc1 on the VPU: K=2 contraction as two broadcast multiply-adds (f32).
        z1 = (w1[:, 0:1] * xt[0:1, :]
              + w1[:, 1:2] * xt[1:2, :]
              + b1_ref[...])                              # [128, TILE_B] f32

        if bf16_tanh:
            # v6e/v7x: bf16 EUP — packed vregs, ~half the tanh pushes, and the
            # result feeds a bf16 MXU matmul anyway.
            h1 = jnp.tanh(z1.astype(jnp.bfloat16))        # bf16
        else:
            # v5e: no bf16 EUP — compute tanh in f32, cast once for the MXU.
            h1 = jnp.tanh(z1).astype(jnp.bfloat16)

        # fc2 on the MXU: bf16 operands (weights pre-cast in wrapper), f32 acc.
        z2 = jnp.dot(w2_ref[...], h1,
                     preferred_element_type=jnp.float32) + b2_ref[...]

        if bf16_tanh:
            h2 = jnp.tanh(z2.astype(jnp.bfloat16))        # bf16
        else:
            h2 = jnp.tanh(z2).astype(jnp.bfloat16)

        # dropout(p=0.5) is identity here (PyTorch eval() semantics).
        # TODO(synk): training-mode dropout would use pltpu.prng_seed +
        # pltpu.prng_random_bits and a 1/(1-p) rescale.

        # fc3 on the MXU: [3,128] @ [128, TILE_B] -> lane-dense [3, TILE_B].
        z3 = jnp.dot(w3_ref[...], h2,
                     preferred_element_type=jnp.float32) + b3_ref[...]
        o_ref[...] = z3.astype(o_ref.dtype)               # [3, TILE_B]

    return kernel


def _chip_kind():
    try:
        return jax.devices()[0].device_kind.lower()
    except Exception:
        return "unknown"


def _pick_tile(Bp, desired, prefer_two_steps):
    """Largest multiple of 128 that divides Bp and is <= desired."""
    desired = max(128, min(desired, Bp))
    desired = (desired // 128) * 128
    if prefer_two_steps and Bp >= 256:
        # Keep >= 2 grid steps so v7x's two TensorCores both get work.
        desired = max(128, min(desired, (Bp // 2 // 128) * 128))
    tile = 128
    for cand in range(desired, 0, -128):
        if Bp % cand == 0:
            tile = cand
            break
    return tile


def net_forward(x, params, tile_b=8192):
    """x: [B, 2] float32  ->  [B, 3] float32."""
    B = x.shape[0]
    xt = x.T.astype(jnp.float32)                          # [2, B]: batch on lanes

    kind = _chip_kind()
    is_v7 = "v7" in kind
    is_pre_v6 = any(g in kind for g in ("v2", "v3", "v4", "v5"))
    bf16_tanh = not is_pre_v6                             # v6e/v7x (and unknown) use bf16 tanh

    # Pad only to a lane multiple (128), not to a multiple of the tile.
    Bp = _round_up(max(B, 1), 128)
    if Bp != B:
        xt = jnp.pad(xt, ((0, 0), (0, Bp - B)))

    tile = _pick_tile(Bp, tile_b, prefer_two_steps=is_v7)
    grid = (Bp // tile,)
    const = lambda i: (0, 0)                              # weights stay resident

    # Generation-aware scoped-VMEM limit: v5e default is 16 MiB (too small for
    # 8192-col f32 intermediates + double-buffered I/O); v7x physical is 64 MiB.
    vmem_limit = (48 << 20) if is_v7 else (64 << 20)

    # Pre-cast the MXU weights once in the wrapper (no per-step pack ops).
    w2_bf16 = params["w2"].astype(jnp.bfloat16)
    w3_bf16 = params["w3"].astype(jnp.bfloat16)

    out_t = pl.pallas_call(
        _make_mlp_kernel(bf16_tanh),
        out_shape=jax.ShapeDtypeStruct((OUT_DIM, Bp), jnp.float32),
        grid=grid,
        in_specs=[
            pl.BlockSpec((IN_DIM, tile), lambda i: (0, i)),     # x (tiled)
            pl.BlockSpec((HIDDEN, IN_DIM), const),              # w1  f32
            pl.BlockSpec((HIDDEN, 1), const),                   # b1  f32
            pl.BlockSpec((HIDDEN, HIDDEN), const),              # w2  bf16
            pl.BlockSpec((HIDDEN, 1), const),                   # b2  f32
            pl.BlockSpec((OUT_DIM, HIDDEN), const),             # w3  bf16
            pl.BlockSpec((OUT_DIM, 1), const),                  # b3  f32
        ],
        out_specs=pl.BlockSpec((OUT_DIM, tile), lambda i: (0, i)),
        compiler_params=pltpu.CompilerParams(
            dimension_semantics=("parallel",),
            vmem_limit_bytes=vmem_limit),
    )(xt,
      params["w1"], params["b1"],
      w2_bf16, params["b2"],
      w3_bf16, params["b3"])

    # NOTE: if the consumer can accept feature-major [3, B], return out_t[:, :B]
    # directly and skip this transpose (saves an extra HBM pass at large B).
    return out_t[:, :B].T                                  # [B, 3]


def init_params(key):
    """nn.Linear-style init, stored in PyTorch [out_features, in_features]
    layout (kernel computes W @ x_t) with biases as [out_features, 1]."""
    ks = jax.random.split(key, 6)

    def lin(kw, kb, fan_in, fan_out):
        bound = 1.0 / jnp.sqrt(float(fan_in))
        w = jax.random.uniform(kw, (fan_out, fan_in), jnp.float32, -bound, bound)
        b = jax.random.uniform(kb, (fan_out, 1), jnp.float32, -bound, bound)
        return w, b

    w1, b1 = lin(ks[0], ks[1], IN_DIM, HIDDEN)
    w2, b2 = lin(ks[2], ks[3], HIDDEN, HIDDEN)
    w3, b3 = lin(ks[4], ks[5], HIDDEN, OUT_DIM)
    return {"w1": w1, "b1": b1, "w2": w2, "b2": b2, "w3": w3, "b3": b3}


def net_forward_ref(x, p):
    """Pure-JAX f32 reference (standard batch-major layout)."""
    h1 = jnp.tanh(x @ p["w1"].T + p["b1"].T)
    h2 = jnp.tanh(h1 @ p["w2"].T + p["b2"].T)
    return h2 @ p["w3"].T + p["b3"].T


if __name__ == "__main__":
    key = jax.random.PRNGKey(0)
    k_param, k_x = jax.random.split(key)

    params = init_params(k_param)
    x = jax.random.normal(k_x, (8, 2), jnp.float32)       # batch=8, 2 features

    out = net_forward(x, params)
    jax.block_until_ready(out)

    ref = net_forward_ref(x, params)
    assert out.shape == (8, 3)
    # bf16 matmul operands (+ bf16 tanh on v6e/v7x) with f32 accumulation
    # => relaxed tolerance vs f32 reference.
    assert jnp.allclose(out, ref, atol=5e-2, rtol=5e-2), (
        f"max abs err {jnp.max(jnp.abs(out - ref))}")

    print("KERNEL_OK")
</pallas_src>

<mosaic_0001>
module attributes {stable_mosaic.version = 11 : i64} {
  func.func @kernel(%arg0: i32, %arg1: memref<2x128xf32, #tpu.memory_space<vmem>>, %arg2: memref<128x2xf32, #tpu.memory_space<vmem>>, %arg3: memref<128x1xf32, #tpu.memory_space<vmem>>, %arg4: memref<128x128xbf16, #tpu.memory_space<vmem>>, %arg5: memref<128x1xf32, #tpu.memory_space<vmem>>, %arg6: memref<3x128xbf16, #tpu.memory_space<vmem>>, %arg7: memref<3x1xf32, #tpu.memory_space<vmem>>, %arg8: memref<3x128xf32, #tpu.memory_space<vmem>>) attributes {dimension_semantics = [#tpu.dimension_semantics<parallel>], iteration_bounds = array<i64: 1>, scalar_prefetch = 0 : i64, scratch_operands = 0 : i64, tpu.core_type = #tpu.core_type<tc>, window_params = [{transform_indices = @transform_0, window_bounds = array<i64: 2, 128>}, {pipeline_mode = #tpu.pipeline_mode<synchronous>, transform_indices = @transform_1, window_bounds = array<i64: 128, 2>}, {pipeline_mode = #tpu.pipeline_mode<synchronous>, transform_indices = @transform_2, window_bounds = array<i64: 128, 1>}, {pipeline_mode = #tpu.pipeline_mode<synchronous>, transform_indices = @transform_3, window_bounds = array<i64: 128, 128>}, {pipeline_mode = #tpu.pipeline_mode<synchronous>, transform_indices = @transform_4, window_bounds = array<i64: 128, 1>}, {pipeline_mode = #tpu.pipeline_mode<synchronous>, transform_indices = @transform_5, window_bounds = array<i64: 3, 128>}, {pipeline_mode = #tpu.pipeline_mode<synchronous>, transform_indices = @transform_6, window_bounds = array<i64: 3, 1>}, {transform_indices = @transform_7, window_bounds = array<i64: 3, 128>}]} {
    %c0 = arith.constant 0 : index
    %c0_0 = arith.constant 0 : index
    %0 = vector.load %arg1[%c0, %c0_0] : memref<2x128xf32, #tpu.memory_space<vmem>>, vector<2x128xf32>
    %c0_1 = arith.constant 0 : index
    %c0_2 = arith.constant 0 : index
    %1 = vector.load %arg2[%c0_1, %c0_2] : memref<128x2xf32, #tpu.memory_space<vmem>>, vector<128x2xf32>
    %2 = vector.extract_strided_slice %1 {offsets = [0, 0], sizes = [128, 1], strides = [1, 1]} : vector<128x2xf32> to vector<128x1xf32>
    %3 = vector.extract_strided_slice %0 {offsets = [0, 0], sizes = [1, 128], strides = [1, 1]} : vector<2x128xf32> to vector<1x128xf32>
    %4 = vector.broadcast %2 : vector<128x1xf32> to vector<128x128xf32>
    %5 = vector.broadcast %3 : vector<1x128xf32> to vector<128x128xf32>
    %6 = arith.mulf %4, %5 : vector<128x128xf32>
    %7 = vector.extract_strided_slice %1 {offsets = [0, 1], sizes = [128, 1], strides = [1, 1]} : vector<128x2xf32> to vector<128x1xf32>
    %8 = vector.extract_strided_slice %0 {offsets = [1, 0], sizes = [1, 128], strides = [1, 1]} : vector<2x128xf32> to vector<1x128xf32>
    %9 = vector.broadcast %7 : vector<128x1xf32> to vector<128x128xf32>
    %10 = vector.broadcast %8 : vector<1x128xf32> to vector<128x128xf32>
    %11 = arith.mulf %9, %10 : vector<128x128xf32>
    %12 = arith.addf %6, %11 : vector<128x128xf32>
    %c0_3 = arith.constant 0 : index
    %c0_4 = arith.constant 0 : index
    %13 = vector.load %arg3[%c0_3, %c0_4] : memref<128x1xf32, #tpu.memory_space<vmem>>, vector<128x1xf32>
    %14 = vector.broadcast %13 : vector<128x1xf32> to vector<128x128xf32>
    %15 = arith.addf %12, %14 : vector<128x128xf32>
    %16 = arith.truncf %15 : vector<128x128xf32> to vector<128x128xbf16>
    %17 = math.tanh %16 : vector<128x128xbf16>
    %c0_5 = arith.constant 0 : index
    %c0_6 = arith.constant 0 : index
    %18 = vector.load %arg4[%c0_5, %c0_6] : memref<128x128xbf16, #tpu.memory_space<vmem>>, vector<128x128xbf16>
    %cst = arith.constant dense<0.000000e+00> : vector<128x128xf32>
    %19 = tpu.matmul %18, %17, %cst {dimension_numbers = #tpu.dot_dimension_numbers<[1], [0], [0], [1], [0, 0, 1, 1], [], []>} : vector<128x128xbf16>, vector<128x128xbf16>, vector<128x128xf32> -> vector<128x128xf32>
    %c0_7 = arith.constant 0 : index
    %c0_8 = arith.constant 0 : index
    %20 = vector.load %arg5[%c0_7, %c0_8] : memref<128x1xf32, #tpu.memory_space<vmem>>, vector<128x1xf32>
    %21 = vector.broadcast %20 : vector<128x1xf32> to vector<128x128xf32>
    %22 = arith.addf %19, %21 : vector<128x128xf32>
    %23 = arith.truncf %22 : vector<128x128xf32> to vector<128x128xbf16>
    %24 = math.tanh %23 : vector<128x128xbf16>
    %c0_9 = arith.constant 0 : index
    %c0_10 = arith.constant 0 : index
    %25 = vector.load %arg6[%c0_9, %c0_10] : memref<3x128xbf16, #tpu.memory_space<vmem>>, vector<3x128xbf16>
    %cst_11 = arith.constant dense<0.000000e+00> : vector<3x128xf32>
    %26 = tpu.matmul %25, %24, %cst_11 {dimension_numbers = #tpu.dot_dimension_numbers<[1], [0], [0], [1], [0, 0, 1, 1], [], []>} : vector<3x128xbf16>, vector<128x128xbf16>, vector<3x128xf32> -> vector<3x128xf32>
    %c0_12 = arith.constant 0 : index
    %c0_13 = arith.constant 0 : index
    %27 = vector.load %arg7[%c0_12, %c0_13] : memref<3x1xf32, #tpu.memory_space<vmem>>, vector<3x1xf32>
    %28 = vector.broadcast %27 : vector<3x1xf32> to vector<3x128xf32>
    %29 = arith.addf %26, %28 : vector<3x128xf32>
    %c0_14 = arith.constant 0 : index
    %c0_15 = arith.constant 0 : index
    %30 = vector.load %arg8[%c0_14, %c0_15] : memref<3x128xf32, #tpu.memory_space<vmem>>, vector<3x128xf32>
    tpu.vector_store %arg8[%c0_14, %c0_15], %29 {strides = array<i32>} : memref<3x128xf32, #tpu.memory_space<vmem>>, vector<3x128xf32>,
    return
  }
  func.func @transform_0(%arg0: i32) -> (i32, i32) {
    %c0_i32 = arith.constant 0 : i32
    %c0_i32_0 = arith.constant 0 : i32
    return %c0_i32, %arg0 : i32, i32
  }
  func.func @transform_1(%arg0: i32) -> (i32, i32) {
    %c0_i32 = arith.constant 0 : i32
    %c0_i32_0 = arith.constant 0 : i32
    %c0_i32_1 = arith.constant 0 : i32
    return %c0_i32, %c0_i32_0 : i32, i32
  }
  func.func @transform_2(%arg0: i32) -> (i32, i32) {
    %c0_i32 = arith.constant 0 : i32
    %c0_i32_0 = arith.constant 0 : i32
    %c0_i32_1 = arith.constant 0 : i32
    return %c0_i32, %c0_i32_0 : i32, i32
  }
  func.func @transform_3(%arg0: i32) -> (i32, i32) {
    %c0_i32 = arith.constant 0 : i32
    %c0_i32_0 = arith.constant 0 : i32
    %c0_i32_1 = arith.constant 0 : i32
    return %c0_i32, %c0_i32_0 : i32, i32
  }
  func.func @transform_4(%arg0: i32) -> (i32, i32) {
    %c0_i32 = arith.constant 0 : i32
    %c0_i32_0 = arith.constant 0 : i32
    %c0_i32_1 = arith.constant 0 : i32
    return %c0_i32, %c0_i32_0 : i32, i32
  }
  func.func @transform_5(%arg0: i32) -> (i32, i32) {
    %c0_i32 = arith.constant 0 : i32
    %c0_i32_0 = arith.constant 0 : i32
    %c0_i32_1 = arith.constant 0 : i32
    return %c0_i32, %c0_i32_0 : i32, i32
  }
  func.func @transform_6(%arg0: i32) -> (i32, i32) {
    %c0_i32 = arith.constant 0 : i32
    %c0_i32_0 = arith.constant 0 : i32
    %c0_i32_1 = arith.constant 0 : i32
    return %c0_i32, %c0_i32_0 : i32, i32
  }
  func.func @transform_7(%arg0: i32) -> (i32, i32) {
    %c0_i32 = arith.constant 0 : i32
    %c0_i32_0 = arith.constant 0 : i32
    return %c0_i32, %arg0 : i32, i32
  }
}

</mosaic_0001>

<bundles_post_ra>
// kernel: tpu_custom_call.1
= control target key start
LH: loop header
LB: loop body
LE: loop exit
PB: predicated region body
PF: predicated region fallthrough
CT: control target
= control target key end

     0   :  { %12 = vsyncpa [#allocation3], 0  ;;  %s1403_s0 = inlined_call_operand.hbm [shape: f32[2,128], index: 0, kind: input, shape index: {}]   ;;  %s1404_s1 = inlined_call_operand.hbm [shape: f32[128,2], index: 1, kind: input, shape index: {}]   ;;  %s1405_s2 = inlined_call_operand.hbm [shape: f32[128,1], index: 2, kind: input, shape index: {}]   ;;  %s1406_s3 = inlined_call_operand.hbm [shape: bf16[128,128], index: 3, kind: input, shape index: {}]   ;;  %s1407_s4 = inlined_call_operand.hbm [shape: f32[128,1], index: 4, kind: input, shape index: {}]   ;;  %s1408_s5 = inlined_call_operand.hbm [shape: bf16[3,128], index: 5, kind: input, shape index: {}]   ;;  %s1409_s6 = inlined_call_operand.hbm [shape: f32[3,1], index: 6, kind: input, shape index: {}]   ;;  %s1410_s7 = inlined_call_operand.hbm [shape: f32[3,128], index: 7, kind: output, shape index: {}]  }
   0x1   :  { %13 = vsyncpa [#allocation6], 0 }
   0x2   :  { %14 = vsyncpa [#allocation9], 0 }
   0x3   :  { %15 = vsyncpa [#allocation12], 0 }
   0x4   :  { %16 = vsyncpa [#allocation4], 0  ;;  %s1146_s24 = smov [#allocation5]   ;;  %s960_s28 = scalar_lea.hbm %s1404_s1, 2048 }
   0x5   :  { %s32_s25 = sshll.u32 %s1146_s24, 4  ;;  %p961_p0 = scmp.ne.s32.totalorder %s1404_s1, %s960_s28  ;;  %s33_s25 = int_to_ptr.vmem [resolvable:$true] %s32_s25 }
   0x6   :  { %p964_p1 = scmp.lt.u32.totalorder %s960_s28, %s1404_s1 }
   0x8   :  { %p966_p2 = pnand %p964_p1, %p961_p0 }
   0xa   :  { %969 = shalt.err (!%p966_p2)
}
   0xb   :  { %s970_s10 = scalar_lea.vmem %s33_s25, 2048  ;;  %p975_p4 = scmp.lt.s32.totalorder %s33_s25, %s33_s25 }
   0xc   :  { %p971_p3 = scmp.ne.s32.totalorder %s33_s25, %s970_s10  ;;  %p976_p5 = scmp.lt.s32.totalorder %s970_s10, %s970_s10 }
   0xe   :  { %p977_p6 = por %p976_p5, %p975_p4 }
  0x10   :  { %p978_p7 = pnand %p977_p6, %p971_p3 }
  0x12   :  { %981 = shalt.err (!%p978_p7)
}
  0x13   :  { %s1147_s11 = smov 128   ;;  %s1148_s12 = smov 8  }
  0x14   :  { %38 = dma.hbm_to_vmem [thread:$0]  %s1404_s1, 2048, %s33_s25, [#allocation6], %s1147_s11, %s1147_s11, %s1148_s12  }
  0x15   :  { %s1149_s15 = smov [#allocation8]   ;;  %s982_s19 = scalar_lea.hbm %s1406_s3, 1024 }
  0x16   :  { %s56_s16 = sshll.u32 %s1149_s15, 4  ;;  %p983_p8 = scmp.ne.s32.totalorder %s1406_s3, %s982_s19  ;;  %s57_s16 = int_to_ptr.vmem [resolvable:$true] %s56_s16 }
  0x17   :  { %p986_p9 = scmp.lt.u32.totalorder %s982_s19, %s1406_s3 }
  0x19   :  { %p988_p10 = pnand %p986_p9, %p983_p8 }
  0x1b   :  { %991 = shalt.err (!%p988_p10)
}
  0x1c   :  { %s992_s24 = scalar_lea.vmem %s57_s16, 1024  ;;  %p997_p12 = scmp.lt.s32.totalorder %s57_s16, %s57_s16 }
  0x1d   :  { %p993_p11 = scmp.ne.s32.totalorder %s57_s16, %s992_s24  ;;  %p998_p13 = scmp.lt.s32.totalorder %s992_s24, %s992_s24 }
  0x1f   :  { %p999_p0 = por %p998_p13, %p997_p12 }
  0x21   :  { %p1000_p1 = pnand %p999_p0, %p993_p11 }
  0x23   :  { %1003 = shalt.err (!%p1000_p1)
}
  0x24   :  { %s1150_s1 = smov 64   ;;  %s1151_s25 = smov 4  }
  0x25   :  { %62 = dma.hbm_to_vmem [thread:$0]  %s1406_s3, 1024, %s57_s16, [#allocation9], %s1150_s1, %s1150_s1, %s1151_s25  }
  0x26   :  { %s1152_s28 = smov [#allocation11]   ;;  %s1153_s30 = smov [#allocation2]  }
  0x27   :  { %s81_s29 = sshll.u32 %s1152_s28, 4  ;;  %s23_s8 = sshll.u32 %s1153_s30, 4  ;;  %s82_s29 = int_to_ptr.vmem [resolvable:$true] %s81_s29  ;;  %s24_s8 = int_to_ptr.vmem [resolvable:$true] %s23_s8 }
  0x28   :  { %s1004_s13 = scalar_lea.hbm %s1408_s5, 32 }
  0x29   :  { %p1005_p2 = scmp.ne.s32.totalorder %s1408_s5, %s1004_s13  ;;  %p1008_p3 = scmp.lt.u32.totalorder %s1004_s13, %s1408_s5 }
  0x2b   :  { %p1010_p4 = pnand %p1008_p3, %p1005_p2 }
  0x2d   :  { %1013 = shalt.err (!%p1010_p4)
}
  0x2e   :  { %s1014_s3 = scalar_lea.vmem %s82_s29, 32  ;;  %p1019_p6 = scmp.lt.s32.totalorder %s82_s29, %s82_s29 }
  0x2f   :  { %p1015_p5 = scmp.ne.s32.totalorder %s82_s29, %s1014_s3  ;;  %p1020_p7 = scmp.lt.s32.totalorder %s1014_s3, %s1014_s3 }
  0x31   :  { %p1021_p8 = por %p1020_p7, %p1019_p6 }
  0x33   :  { %p1022_p9 = pnand %p1021_p8, %p1015_p5 }
  0x35   :  { %1025 = shalt.err (!%p1022_p9)
}
  0x36   :  { %84 = dma.hbm_to_vmem [thread:$0]  %s1408_s5, 32, %s82_s29, [#allocation12]  }
  0x37   :  { %s1026_s22 = scalar_lea.hbm %s1403_s0, 32 }
  0x38   :  { %p1027_p10 = scmp.ne.s32.totalorder %s1403_s0, %s1026_s22  ;;  %p1030_p11 = scmp.lt.u32.totalorder %s1026_s22, %s1403_s0 }
  0x3a   :  { %p1032_p12 = pnand %p1030_p11, %p1027_p10 }
  0x3c   :  { %1035 = shalt.err (!%p1032_p12)
}
  0x3d   :  { %s1036_s26 = scalar_lea.vmem %s24_s8, 32  ;;  %p1041_p0 = scmp.lt.s32.totalorder %s24_s8, %s24_s8 }
  0x3e   :  { %p1037_p13 = scmp.ne.s32.totalorder %s24_s8, %s1036_s26  ;;  %p1042_p1 = scmp.lt.s32.totalorder %s1036_s26, %s1036_s26 }
  0x40   :  { %p1043_p2 = por %p1042_p1, %p1041_p0 }
  0x42   :  { %p1044_p3 = pnand %p1043_p2, %p1037_p13 }
  0x44   :  { %1047 = shalt.err (!%p1044_p3)
}
  0x45   :  { %26 = dma.hbm_to_vmem [thread:$0]  %s1403_s0, 32, %s24_s8, [#allocation3]  }
  0x46   :  { %s1154_s28 = smov [#allocation7]   ;;  %s1155_s30 = smov [#allocation10]  }
  0x47   :  { %s44_s29 = sshll.u32 %s1154_s28, 4  ;;  %s68_s9 = sshll.u32 %s1155_s30, 4  ;;  %s45_s29 = int_to_ptr.vmem [resolvable:$true] %s44_s29  ;;  %s1253_s9 = int_to_ptr.vmem [resolvable:$true] %s68_s9 }
  0x48   :  { %s1048_s14 = scalar_lea.hbm %s1405_s2, 2048 }
  0x49   :  { %p1049_p4 = scmp.ne.s32.totalorder %s1405_s2, %s1048_s14  ;;  %p1052_p5 = scmp.lt.u32.totalorder %s1048_s14, %s1405_s2 }
  0x4b   :  { %p1054_p6 = pnand %p1052_p5, %p1049_p4 }
  0x4d   :  { %1057 = shalt.err (!%p1054_p6)
}
  0x4e   :  { %s1058_s0 = scalar_lea.vmem %s45_s29, 2048  ;;  %p1063_p8 = scmp.lt.s32.totalorder %s45_s29, %s45_s29 }
  0x4f   :  { %p1059_p7 = scmp.ne.s32.totalorder %s45_s29, %s1058_s0  ;;  %p1064_p9 = scmp.lt.s32.totalorder %s1058_s0, %s1058_s0 }
  0x51   :  { %p1065_p10 = por %p1064_p9, %p1063_p8 }
  0x53   :  { %p1066_p11 = pnand %p1065_p10, %p1059_p7 }
  0x55   :  { %1069 = shalt.err (!%p1066_p11)
}
  0x56   :  { %50 = dma.hbm_to_vmem [thread:$0]  %s1405_s2, 2048, %s45_s29, [#allocation6], %s1147_s11, %s1147_s11, %s1148_s12  }
  0x57   :  { %s1070_s21 = scalar_lea.hbm %s1407_s4, 2048 }
  0x58   :  { %p1071_p12 = scmp.ne.s32.totalorder %s1407_s4, %s1070_s21  ;;  %p1074_p13 = scmp.lt.u32.totalorder %s1070_s21, %s1407_s4 }
  0x5a   :  { %p1076_p0 = pnand %p1074_p13, %p1071_p12 }
  0x5c   :  { %1079 = shalt.err (!%p1076_p0)
}
  0x5d   :  { %s1080_s25 = scalar_lea.vmem %s1253_s9, 2048  ;;  %p1085_p2 = scmp.lt.s32.totalorder %s1253_s9, %s1253_s9 }
  0x5e   :  { %p1081_p1 = scmp.ne.s32.totalorder %s1253_s9, %s1080_s25  ;;  %p1086_p3 = scmp.lt.s32.totalorder %s1080_s25, %s1080_s25 }
  0x60   :  { %p1087_p4 = por %p1086_p3, %p1085_p2 }
  0x62   :  { %p1088_p5 = pnand %p1087_p4, %p1081_p1 }
  0x64   :  { %1091 = shalt.err (!%p1088_p5)
}
  0x65   :  { %74 = dma.hbm_to_vmem [thread:$0]  %s1407_s4, 2048, %s1253_s9, [#allocation9], %s1147_s11, %s1147_s11, %s1148_s12  }
  0x66   :  { %s1156_s5 = smov [#allocation13]   ;;  %s1092_s30 = scalar_lea.hbm %s1409_s6, 64 }
  0x67   :  { %s91_s27 = sshll.u32 %s1156_s5, 4  ;;  %p1093_p6 = scmp.ne.s32.totalorder %s1409_s6, %s1092_s30  ;;  %s92_s27 = int_to_ptr.vmem [resolvable:$true] %s91_s27 }
  0x68   :  { %p1096_p7 = scmp.lt.u32.totalorder %s1092_s30, %s1409_s6 }
  0x6a   :  { %p1098_p8 = pnand %p1096_p7, %p1093_p6 }
  0x6c   :  { %1101 = shalt.err (!%p1098_p8)
}
  0x6d   :  { %s1102_s17 = scalar_lea.vmem %s92_s27, 64  ;;  %p1107_p10 = scmp.lt.s32.totalorder %s92_s27, %s92_s27 }
  0x6e   :  { %p1103_p9 = scmp.ne.s32.totalorder %s92_s27, %s1102_s17  ;;  %p1108_p11 = scmp.lt.s32.totalorder %s1102_s17, %s1102_s17 }
  0x70   :  { %p1109_p12 = por %p1108_p11, %p1107_p10 }
  0x72   :  { %p1110_p13 = pnand %p1109_p12, %p1103_p9 }
  0x74   :  { %1113 = shalt.err (!%p1110_p13)
}
  0x75   :  { %94 = dma.hbm_to_vmem [thread:$0]  %s1409_s6, 64, %s92_s27, [#allocation12]  }
  0x76   :  { %1136 = dma.done.wait [#allocation3], 32  }
  0x77   :  { %1137 = vsyncadd [#allocation3], 4294967264 }
  0x78   :  { %1138 = dma.done.wait [#allocation6], 4096  }
  0x79   :  { %1139 = vsyncadd [#allocation6], 4294963200 }
  0x7a   :  { %1140 = dma.done.wait [#allocation9], 3072  }
  0x7b   :  { %1141 = vsyncadd [#allocation9], 4294964224 }
  0x7c   :  { %1142 = dma.done.wait [#allocation12], 96  }
  0x7d   :  { %1143 = vsyncadd [#allocation12], 4294967200  ;;  %v1157_v0 = vmov 1   ;;  %v120_v1 = vld [vmem:[#allocation5 + $0x10] sm:$0xff]  ;;  %v118_v2 = vld [vmem:[#allocation5] sm:$0xff]  ;;  %v1158_v7 = vmov 0   ;;  %v214_v56 = vlaneseq }
  0x7e   :  { %904 = vset.pattern.permute.xlu0 %v1157_v0  ;;  %902 = vset.pattern.permute.xlu1 %v1157_v0  ;;  %v122_v3 = vld [vmem:[#allocation5 + $0x20] sm:$0xff]  ;;  %v119_v4 = vld [vmem:[#allocation5 + $0x8] sm:$0xff]  ;;  %v124_v5 = vld [vmem:[#allocation5 + $0x30] sm:$0xff]  ;;  %vm1160_vm0 = vmmov 0   ;;  %s1161_s6 = smov [#allocation14]  }
  0x7f   :  { %243 = vperm.xlu0 %904, %v120_v1   ;;  %235 = vperm.xlu1 %902, %v118_v2   ;;  %v121_v6 = vld [vmem:[#allocation5 + $0x18] sm:$0xff]  ;;  %v126_v8 = vld [vmem:[#allocation5 + $0x40] sm:$0xff]  ;;  %v128_v9 = vld [vmem:[#allocation5 + $0x50] sm:$0xff]  ;;  %v215_v60 = vshrl.u32 %v214_v56, 7  ;;  %s789_s12 = sshll.u32 %s1161_s6, 4  ;;  %s790_s12 = int_to_ptr.vmem [resolvable:$true] %s789_s12 }
  0x80   :  { %v334_v10 = vld [vmem:[#allocation7] sm:$0xff]  ;;  %v1310_v12 = vld [vmem:[#allocation5 + $0x70] sm:$0xff]  ;;  %v123_v13 = vld [vmem:[#allocation5 + $0x28] sm:$0xff]  ;;  %s1114_s9 = scalar_lea.vmem %s790_s12, 64  ;;  %p1119_p1 = scmp.lt.s32.totalorder %s790_s12, %s790_s12 }
  0x81   :  { %v1306_v11 = vld [vmem:[#allocation5 + $0x60] sm:$0xff]  ;;  %v336_v14 = vld [vmem:[#allocation7 + $0x10] sm:$0xff]  ;;  %v335_v15 = vld [vmem:[#allocation7 + $0x8] sm:$0xff]  ;;  %p1115_p0 = scmp.ne.s32.totalorder %s790_s12, %s1114_s9  ;;  %p1120_p2 = scmp.lt.s32.totalorder %s1114_s9, %s1114_s9 }
  0x82   :  { %v337_v16 = vld [vmem:[#allocation7 + $0x18] sm:$0xff]  ;;  %v339_v18 = vld [vmem:[#allocation7 + $0x28] sm:$0xff]  ;;  %v338_v20 = vld [vmem:[#allocation7 + $0x20] sm:$0xff] }
  0x83   :  { %251 = vperm.xlu0 %904, %v122_v3   ;;  %239 = vperm.xlu1 %902, %v119_v4   ;;  %v125_v17 = vld [vmem:[#allocation5 + $0x38] sm:$0xff]  ;;  %v343_v21 = vld [vmem:[#allocation7 + $0x48] sm:$0xff]  ;;  %v478_v25 = vld [vmem:[#allocation10] sm:$0xff]  ;;  %p1121_p3 = por %p1120_p2, %p1119_p1 }
  0x84   :  { %v341_v19 = vld [vmem:[#allocation7 + $0x38] sm:$0xff]  ;;  %v127_v23 = vld [vmem:[#allocation5 + $0x48] sm:$0xff]  ;;  %v480_v26 = vld [vmem:[#allocation10 + $0x10] sm:$0xff] }
  0x85   :  { %v345_v22 = vld [vmem:[#allocation7 + $0x58] sm:$0xff]  ;;  %v347_v24 = vld [vmem:[#allocation7 + $0x68] sm:$0xff]  ;;  %v340_v27 = vld [vmem:[#allocation7 + $0x30] sm:$0xff]  ;;  %p1122_p4 = pnand %p1121_p3, %p1115_p0 }
  0x86   :  { %v482_v28 = vld [vmem:[#allocation10 + $0x20] sm:$0xff]  ;;  %v484_v29 = vld [vmem:[#allocation10 + $0x30] sm:$0xff]  ;;  %v129_v30 = vld [vmem:[#allocation5 + $0x58] sm:$0xff] }
  0x87   :  { %259 = vperm.xlu0 %904, %v124_v5   ;;  %903 = vset.pattern.permute.xlu1 %v1158_v7  ;;  %v486_v31 = vld [vmem:[#allocation10 + $0x40] sm:$0xff]  ;;  %v488_v32 = vld [vmem:[#allocation10 + $0x50] sm:$0xff]  ;;  %v131_v36 = vld [vmem:[#allocation5 + $0x68] sm:$0xff] }
  0x88   :  { %151 = vperm.xlu1 %903, %v121_v6   ;;  %v342_v33 = vld [vmem:[#allocation7 + $0x40] sm:$0xff]  ;;  %v492_v35 = vld [vmem:[#allocation10 + $0x70] sm:$0xff]  ;;  %v133_v39 = vld [vmem:[#allocation5 + $0x78] sm:$0xff] }
  0x89   :  { %v490_v34 = vld [vmem:[#allocation10 + $0x60] sm:$0xff]  ;;  %v344_v38 = vld [vmem:[#allocation7 + $0x50] sm:$0xff]  ;;  %v349_v46 = vld [vmem:[#allocation7 + $0x78] sm:$0xff] }
  0x8a   :  { %v736_v37 = vld [vmem:[#allocation13] sm:$0x7]  ;;  %v348_v43 = vld [vmem:[#allocation7 + $0x70] sm:$0xff]  ;;  %v479_v49 = vld [vmem:[#allocation10 + $0x8] sm:$0xff] }
  0x8b   :  { %267 = vperm.xlu0 %904, %v126_v8   ;;  %v346_v40 = vld [vmem:[#allocation7 + $0x60] sm:$0xff]  ;;  %v481_v51 = vld [vmem:[#allocation10 + $0x18] sm:$0xff]  ;;  %v483_v54 = vld [vmem:[#allocation10 + $0x28] sm:$0xff] }
  0x8c   :  { %905 = vset.pattern.permute.xlu1 %v1157_v0  ;;  %v485_v58 = vld [vmem:[#allocation10 + $0x38] sm:$0xff]  ;;  %v487_v62 = vld [vmem:[#allocation10 + $0x48] sm:$0xff]  ;;  %v920_v63 = vld [vmem:[#allocation8] sm:$0xff]  }
  0x8d   :  { %247 = vperm.xlu1 %905, %v121_v6   ;;  %850 = vmatprep.mubr.bf16.mxu0 %v920_v63 }
  0x8f   :  { %275 = vperm.xlu0 %904, %v128_v9  }
  0x91   :  { %906 = vset.pattern.permute.xlu1 %v1158_v7 }
  0x92   :  { %352 = vperm.xlu1 %906, %v334_v10   ;;  %v491_v10 = vld [vmem:[#allocation10 + $0x68] sm:$0xff] }
  0x93   :  { %283 = vperm.xlu0 %904, %v1306_v11  }
  0x96   :  { %156 = vperm.xlu1 %906, %v122_v3   ;;  %v117_v3 = vld [vmem:[#allocation2] sm:$0x3] }
  0x97   :  { %291 = vperm.xlu0 %904, %v1310_v12  }
  0x9a   :  { %161 = vperm.xlu1 %906, %v123_v13  }
  0x9b   :  { %917 = vset.pattern.permute.xlu0 %v1158_v7 }
  0x9c   :  { %136 = vperm.xlu0 %917, %v118_v2   ;;  %v216_v2 = vsub.s32 0, %v215_v60 }
  0x9e   :  { %907 = vset.pattern.permute.xlu1 %v1157_v0 }
  0x9f   :  { %255 = vperm.xlu1 %907, %v123_v13  }
  0xa0   :  { %141 = vperm.xlu0 %917, %v119_v4  }
  0xa3   :  { %908 = vset.pattern.permute.xlu1 %v1158_v7 }
  0xa4   :  { %146 = vperm.xlu0 %917, %v120_v1   ;;  %362 = vperm.xlu1 %908, %v336_v14   ;;  %v300_v1 = vsub.s32 1, %v215_v60 }
  0xa6   :  { %v1340_v6 = vrot.slane %v117_v3, %v300_v1 }
  0xa8   :  { %357 = vperm.xlu0 %917, %v335_v15   ;;  %166 = vperm.xlu1 %908, %v124_v5   ;;  %v489_v5 = vld [vmem:[#allocation10 + $0x58] sm:$0xff] }
  0xac   :  { %367 = vperm.xlu0 %917, %v337_v16   ;;  %171 = vperm.xlu1 %908, %v125_v17   ;;  %v493_v16 = vld [vmem:[#allocation10 + $0x78] sm:$0xff] }
  0xb0   :  { %377 = vperm.xlu0 %917, %v339_v18   ;;  %909 = vset.pattern.permute.xlu1 %v1157_v0 }
  0xb1   :  { %263 = vperm.xlu1 %909, %v125_v17  }
  0xb4   :  { %387 = vperm.xlu0 %917, %v341_v19  }
  0xb5   :  { %910 = vset.pattern.permute.xlu1 %v1158_v7 }
  0xb6   :  { %372 = vperm.xlu1 %910, %v338_v20  }
  0xb8   :  { %397 = vperm.xlu0 %917, %v343_v21  }
  0xba   :  { %176 = vperm.xlu1 %910, %v126_v8  }
  0xbc   :  { %407 = vperm.xlu0 %917, %v345_v22  }
  0xbe   :  { %181 = vperm.xlu1 %910, %v127_v23  }
  0xc0   :  { %417 = vperm.xlu0 %917, %v347_v24  }
  0xc2   :  { %911 = vset.pattern.permute.xlu1 %v1157_v0 }
  0xc3   :  { %271 = vperm.xlu1 %911, %v127_v23  }
  0xc4   :  { %496 = vperm.xlu0 %917, %v478_v25  }
  0xc7   :  { %912 = vset.pattern.permute.xlu1 %v1158_v7 }
  0xc8   :  { %506 = vperm.xlu0 %917, %v480_v26   ;;  %382 = vperm.xlu1 %912, %v340_v27  }
  0xcc   :  { %516 = vperm.xlu0 %917, %v482_v28   ;;  %186 = vperm.xlu1 %912, %v128_v9  }
  0xd0   :  { %526 = vperm.xlu0 %917, %v484_v29   ;;  %191 = vperm.xlu1 %912, %v129_v30  }
  0xd4   :  { %536 = vperm.xlu0 %917, %v486_v31   ;;  %913 = vset.pattern.permute.xlu1 %v1157_v0 }
  0xd5   :  { %279 = vperm.xlu1 %913, %v129_v30  }
  0xd8   :  { %546 = vperm.xlu0 %917, %v488_v32  }
  0xd9   :  { %914 = vset.pattern.permute.xlu1 %v1158_v7 }
  0xda   :  { %392 = vperm.xlu1 %914, %v342_v33  }
  0xdc   :  { %556 = vperm.xlu0 %917, %v490_v34  }
  0xde   :  { %196 = vperm.xlu1 %914, %v1306_v11  }
  0xe0   :  { %566 = vperm.xlu0 %917, %v492_v35  }
  0xe2   :  { %201 = vperm.xlu1 %914, %v131_v36  }
  0xe4   :  { %739 = vperm.xlu0 %917, %v736_v37  }
  0xe6   :  { %915 = vset.pattern.permute.xlu1 %v1157_v0 }
  0xe7   :  { %287 = vperm.xlu1 %915, %v131_v36  }
  0xeb   :  { %916 = vset.pattern.permute.xlu1 %v1158_v7 }
  0xec   :  { %402 = vperm.xlu1 %916, %v344_v38  }
  0xf0   :  { %206 = vperm.xlu1 %916, %v1310_v12  }
  0xf4   :  { %211 = vperm.xlu1 %916, %v133_v39  }
  0xf8   :  { %918 = vset.pattern.permute.xlu1 %v1157_v0 }
  0xf9   :  { %295 = vperm.xlu1 %918, %v133_v39  }
  0xfd   :  { %919 = vset.pattern.permute.xlu1 %v1158_v7  ;;  %v1342_v7 = vrot.slane %v117_v3, %v216_v2 }
  0xfe   :  { %412 = vperm.xlu1 %919, %v346_v40   ;;  %v236_v41 = vpop.permute.xlu1 %235  ;;  %v244_v42 = vpop.permute.xlu0 %243 }
  0xff   :  { %v302_v12 = vmul.f32 %v1340_v6, %v236_v41  ;;  %v304_v17 = vmul.f32 %v1340_v6, %v244_v42 }
 0x102   :  { %422 = vperm.xlu1 %919, %v348_v43   ;;  %v240_v44 = vpop.permute.xlu1 %239  ;;  %v1328_v45 = vpop.permute.xlu0 %251 }
 0x103   :  { %v303_v18 = vmul.f32 %v1340_v6, %v240_v44  ;;  %v306_v36 = vmul.f32 %v1340_v6, %v1328_v45 }
 0x106   :  { %427 = vperm.xlu1 %919, %v349_v46   ;;  %v1330_v47 = vpop.permute.xlu0 %259 }
 0x107   :  { %v152_v48 = vpop.permute.xlu1 %151  ;;  %v308_v56 = vmul.f32 %v1340_v6, %v1330_v47 }
 0x108   :  { %v221_v25 = vmul.f32 %v1342_v7, %v152_v48 }
 0x10a   :  { %501 = vperm.xlu1 %919, %v479_v49   ;;  %v1332_v50 = vpop.permute.xlu0 %267 }
 0x10c   :  { %v248_v52 = vpop.permute.xlu1 %247 }
 0x10d   :  { %v305_v21 = vmul.f32 %v1340_v6, %v248_v52 }
 0x10e   :  { %511 = vperm.xlu1 %919, %v481_v51   ;;  %v1334_v53 = vpop.permute.xlu0 %275 }
 0x10f   :  { %v321_v30 = vadd.f32 %v305_v21, %v221_v25 }
 0x111   :  { %v353_v55 = vpop.permute.xlu1 %352 }
 0x112   :  { %521 = vperm.xlu1 %919, %v483_v54   ;;  %v1336_v57 = vpop.permute.xlu0 %283 }
 0x115   :  { %v157_v59 = vpop.permute.xlu1 %156 }
 0x116   :  { %531 = vperm.xlu1 %919, %v485_v58   ;;  %v1338_v61 = vpop.permute.xlu0 %291  ;;  %v222_v37 = vmul.f32 %v1342_v7, %v157_v59 }
 0x118   :  { %v322_v43 = vadd.f32 %v306_v36, %v222_v37 }
 0x119   :  { %v162_v0 = vpop.permute.xlu1 %161 }
 0x11a   :  { %541 = vperm.xlu1 %919, %v487_v62   ;;  %v223_v40 = vmul.f32 %v1342_v7, %v162_v0 }
 0x11b   :  { %v137_v4 = vpop.permute.xlu0 %136 }
 0x11c   :  { %v218_v11 = vmul.f32 %v1342_v7, %v137_v4 }
 0x11e   :  { %551 = vperm.xlu1 %919, %v489_v5   ;;  %v256_v8 = vpop.permute.xlu1 %255  ;;  %v318_v19 = vadd.f32 %v302_v12, %v218_v11 }
 0x11f   :  { %v142_v9 = vpop.permute.xlu0 %141  ;;  %v307_v38 = vmul.f32 %v1340_v6, %v256_v8 }
 0x120   :  { %v219_v13 = vmul.f32 %v1342_v7, %v142_v9  ;;  %v430_v27 = vadd.f32 %v353_v55, %v318_v19 }
 0x121   :  { %v323_v42 = vadd.f32 %v307_v38, %v223_v40 }
 0x122   :  { %561 = vperm.xlu1 %919, %v491_v10   ;;  %v319_v22 = vadd.f32 %v303_v18, %v219_v13  ;;  %v310_v10 = vmul.f32 %v1340_v6, %v1332_v50 }
 0x123   :  { %v147_v14 = vpop.permute.xlu0 %146  ;;  %v363_v15 = vpop.permute.xlu1 %362 }
 0x124   :  { %v220_v20 = vmul.f32 %v1342_v7, %v147_v14 }
 0x126   :  { %571 = vperm.xlu1 %919, %v493_v16   ;;  %v320_v26 = vadd.f32 %v304_v17, %v220_v20 }
 0x127   :  { %v358_v23 = vpop.permute.xlu0 %357  ;;  %v167_v24 = vpop.permute.xlu1 %166 }
 0x128   :  { %v431_v28 = vadd.f32 %v358_v23, %v319_v22  ;;  %v432_v33 = vadd.f32 %v363_v15, %v320_v26  ;;  %v224_v58 = vmul.f32 %v1342_v7, %v167_v24 }
 0x12a   :  { %v446_v29 = vpack.c.bf16 %v431_v28, %v430_v27  ;;  %v324_v1 = vadd.f32 %v308_v56, %v224_v58  ;;  %v312_v27 = vmul.f32 %v1340_v6, %v1334_v53  ;;  %v316_v56 = vmul.f32 %v1340_v6, %v1338_v61  ;;  %v923_v61 = vld [vmem:[#allocation8 + $0x18] sm:$0xff]  }
 0x12b   :  { %v368_v31 = vpop.permute.xlu0 %367  ;;  %v172_v32 = vpop.permute.xlu1 %171 }
 0x12c   :  { %928 = vtanh.bf16 %v446_v29  ;;  %v433_v34 = vadd.f32 %v368_v31, %v321_v30  ;;  %v225_v59 = vmul.f32 %v1342_v7, %v172_v32 }
 0x12e   :  { %v447_v35 = vpack.c.bf16 %v433_v34, %v432_v33 }
 0x12f   :  { %v378_v41 = vpop.permute.xlu0 %377 }
 0x130   :  { %930 = vtanh.bf16 %v447_v35  ;;  %v264_v39 = vpop.permute.xlu1 %263  ;;  %v435_v46 = vadd.f32 %v378_v41, %v323_v42  ;;  %v314_v41 = vmul.f32 %v1340_v6, %v1336_v57 }
 0x131   :  { %v309_v55 = vmul.f32 %v1340_v6, %v264_v39 }
 0x133   :  { %v325_v62 = vadd.f32 %v309_v55, %v225_v59  ;;  %v388_v0 = vpop.permute.xlu0 %387 }
 0x135   :  { %v373_v44 = vpop.permute.xlu1 %372  ;;  %v437_v3 = vadd.f32 %v388_v0, %v325_v62 }
 0x136   :  { %v434_v48 = vadd.f32 %v373_v44, %v322_v43 }
 0x137   :  { %v929_v49 = vpop.eup %928  ;;  %v398_v17 = vpop.permute.xlu0 %397 }
 0x138   :  { %v448_v51 = vpack.c.bf16 %v435_v46, %v434_v48  ;;  %834 = vmatprep.subr.bf16.mxu0 %v929_v49 }
 0x139   :  { %v177_v52 = vpop.permute.xlu1 %176  ;;  %835 = vmatpush3.bf16.msra.mxu0 %v929_v49 }
 0x13a   :  { %932 = vtanh.bf16 %v448_v51  ;;  %v226_v11 = vmul.f32 %v1342_v7, %v177_v52 }
 0x13b   :  { %v931_v45 = vpop.eup %930  ;;  %v408_v31 = vpop.permute.xlu0 %407 }
 0x13c   :  { %836 = vmatprep.subr.bf16.mxu0 %v931_v45  ;;  %v326_v16 = vadd.f32 %v310_v10, %v226_v11 }
 0x13d   :  { %v182_v54 = vpop.permute.xlu1 %181  ;;  %837 = vmatpush3.bf16.msra.mxu0 %v931_v45 }
 0x13e   :  { %v227_v12 = vmul.f32 %v1342_v7, %v182_v54 }
 0x13f   :  { %v418_v46 = vpop.permute.xlu0 %417 }
 0x142   :  { %v272_v60 = vpop.permute.xlu1 %271 }
 0x143   :  { %v311_v47 = vmul.f32 %v1340_v6, %v272_v60 }
 0x145   :  { %v933_v63 = vpop.eup %932  ;;  %v327_v14 = vadd.f32 %v311_v47, %v227_v12  ;;  %v497_v47 = vpop.permute.xlu0 %496 }
 0x146   :  { %838 = vmatprep.subr.bf16.mxu0 %v933_v63 }
 0x147   :  { %v383_v2 = vpop.permute.xlu1 %382  ;;  %839 = vmatpush3.bf16.msra.mxu0 %v933_v63  ;;  %v439_v20 = vadd.f32 %v398_v17, %v327_v14 }
 0x148   :  { %v436_v4 = vadd.f32 %v383_v2, %v324_v1 }
 0x149   :  { %v507_v11 = vpop.permute.xlu0 %506 }
 0x14a   :  { %v449_v5 = vpack.c.bf16 %v437_v3, %v436_v4  ;;  %v921_v3 = vld [vmem:[#allocation8 + $0x8] sm:$0xff]   ;;  %v922_v4 = vld [vmem:[#allocation8 + $0x10] sm:$0xff]  }
 0x14b   :  { %v187_v8 = vpop.permute.xlu1 %186 }
 0x14c   :  { %934 = vtanh.bf16 %v449_v5  ;;  %v228_v24 = vmul.f32 %v1342_v7, %v187_v8  ;;  %v926_v5 = vld [vmem:[#allocation8 + $0x30] sm:$0xff]   ;;  %v927_v8 = vld [vmem:[#allocation8 + $0x38] sm:$0xff]  }
 0x14e   :  { %v328_v30 = vadd.f32 %v312_v27, %v228_v24 }
 0x14f   :  { %v192_v9 = vpop.permute.xlu1 %191 }
 0x150   :  { %v229_v25 = vmul.f32 %v1342_v7, %v192_v9  ;;  %v1159_v9 = vmov 0.0  }
 0x151   :  { %866 = vmatprep.subr.bf16.mxu1 %v1159_v9  ;;  %882 = vmatprep.mubr.msk.bf16.mxu1 %vm1160_vm0, %v1159_v9 }
 0x154   :  { %v280_v13 = vpop.permute.xlu1 %279 }
 0x155   :  { %v313_v50 = vmul.f32 %v1340_v6, %v280_v13  ;;  %v517_v13 = vpop.permute.xlu0 %516 }
 0x157   :  { %v935_v15 = vpop.eup %934  ;;  %v329_v28 = vadd.f32 %v313_v50, %v229_v25 }
 0x158   :  { %840 = vmatprep.subr.bf16.mxu0 %v935_v15 }
 0x159   :  { %v393_v18 = vpop.permute.xlu1 %392  ;;  %841 = vmatpush3.bf16.msra.mxu0 %v935_v15  ;;  %v441_v34 = vadd.f32 %v408_v31, %v329_v28 }
 0x15a   :  { %v438_v19 = vadd.f32 %v393_v18, %v326_v16  ;;  %v527_v16 = vpop.permute.xlu0 %526 }
 0x15c   :  { %v450_v21 = vpack.c.bf16 %v439_v20, %v438_v19 }
 0x15d   :  { %v197_v22 = vpop.permute.xlu1 %196 }
 0x15e   :  { %936 = vtanh.bf16 %v450_v21  ;;  %v230_v39 = vmul.f32 %v1342_v7, %v197_v22 }
 0x160   :  { %v330_v44 = vadd.f32 %v314_v41, %v230_v39 }
 0x161   :  { %v202_v23 = vpop.permute.xlu1 %201 }
 0x162   :  { %v231_v40 = vmul.f32 %v1342_v7, %v202_v23 }
 0x166   :  { %v288_v26 = vpop.permute.xlu1 %287 }
 0x167   :  { %v315_v38 = vmul.f32 %v1340_v6, %v288_v26  ;;  %v537_v26 = vpop.permute.xlu0 %536 }
 0x169   :  { %v937_v29 = vpop.eup %936  ;;  %v331_v42 = vadd.f32 %v315_v38, %v231_v40 }
 0x16a   :  { %842 = vmatprep.subr.bf16.mxu0 %v937_v29 }
 0x16b   :  { %v403_v32 = vpop.permute.xlu1 %402  ;;  %843 = vmatpush3.bf16.msra.mxu0 %v937_v29  ;;  %v443_v51 = vadd.f32 %v418_v46, %v331_v42 }
 0x16c   :  { %v440_v33 = vadd.f32 %v403_v32, %v328_v30 }
 0x16e   :  { %v451_v35 = vpack.c.bf16 %v441_v34, %v440_v33 }
 0x16f   :  { %v207_v36 = vpop.permute.xlu1 %206 }
 0x170   :  { %938 = vtanh.bf16 %v451_v35  ;;  %v232_v52 = vmul.f32 %v1342_v7, %v207_v36  ;;  %v547_v36 = vpop.permute.xlu0 %546 }
 0x172   :  { %v332_v58 = vadd.f32 %v316_v56, %v232_v52 }
 0x173   :  { %v212_v37 = vpop.permute.xlu1 %211 }
 0x174   :  { %v233_v57 = vmul.f32 %v1342_v7, %v212_v37  ;;  %v925_v7 = vld [vmem:[#allocation8 + $0x28] sm:$0xff]  }
 0x178   :  { %v296_v53 = vpop.permute.xlu1 %295 }
 0x179   :  { %v317_v45 = vmul.f32 %v1340_v6, %v296_v53  ;;  %v924_v6 = vld [vmem:[#allocation8 + $0x20] sm:$0xff]  }
 0x17b   :  { %v939_v43 = vpop.eup %938  ;;  %v333_v59 = vadd.f32 %v317_v45, %v233_v57 }
 0x17c   :  { %844 = vmatprep.subr.bf16.mxu0 %v939_v43 }
 0x17d   :  { %v413_v48 = vpop.permute.xlu1 %412  ;;  %845 = vmatpush3.bf16.msra.mxu0 %v939_v43  ;;  %v557_v43 = vpop.permute.xlu0 %556 }
 0x17e   :  { %v442_v49 = vadd.f32 %v413_v48, %v330_v44 }
 0x180   :  { %v452_v54 = vpack.c.bf16 %v443_v51, %v442_v49 }
 0x181   :  { %v423_v55 = vpop.permute.xlu1 %422  ;;  %v567_v57 = vpop.permute.xlu0 %566 }
 0x182   :  { %940 = vtanh.bf16 %v452_v54  ;;  %v444_v62 = vadd.f32 %v423_v55, %v332_v58 }
 0x185   :  { %v428_v60 = vpop.permute.xlu1 %427 }
 0x186   :  { %v445_v63 = vadd.f32 %v428_v60, %v333_v59 }
 0x188   :  { %v453_v0 = vpack.c.bf16 %v445_v63, %v444_v62 }
 0x189   :  { %v502_v10 = vpop.permute.xlu1 %501 }
 0x18a   :  { %942 = vtanh.bf16 %v453_v0 }
 0x18d   :  { %v941_v1 = vpop.eup %940  ;;  %v512_v12 = vpop.permute.xlu1 %511 }
 0x18e   :  { %846 = vmatprep.subr.bf16.mxu0 %v941_v1 }
 0x18f   :  { %847 = vmatpush3.bf16.msra.mxu0 %v941_v1 }
 0x191   :  { %v522_v14 = vpop.permute.xlu1 %521 }
 0x195   :  { %v943_v2 = vpop.eup %942  ;;  %v532_v18 = vpop.permute.xlu1 %531 }
 0x196   :  { %848 = vmatprep.subr.bf16.mxu0 %v943_v2 }
 0x197   :  { %849 = vmatpush3.bf16.msra.mxu0 %v943_v2 }
 0x199   :  { %v542_v27 = vpop.permute.xlu1 %541 }
 0x19a   :  { %851 = vmatmul.mubr.bf16.vlgmr.msra.gmra.mrb[0].mxu0 %v921_v3 }
 0x19b   :  { %854 = vmatprep.mubr.bf16.mxu0 %v922_v4 }
 0x19d   :  { %v552_v38 = vpop.permute.xlu1 %551 }
 0x1a1   :  { %v562_v49 = vpop.permute.xlu1 %561 }
 0x1a2   :  { %855 = vmatmul.mubr.bf16.gmra.mrb[4].mxu0 %v923_v61 }
 0x1a3   :  { %858 = vmatprep.mubr.bf16.mxu0 %v924_v6 }
 0x1a5   :  { %v572_v59 = vpop.permute.xlu1 %571 }
 0x1aa   :  { %859 = vmatmul.mubr.bf16.gmra.mrb[8].mxu0 %v925_v7 }
 0x1ab   :  { %862 = vmatprep.mubr.bf16.mxu0 %v926_v5 }
 0x1b2   :  { %863 = vmatmul.mubr.bf16.gmra.mrb[12].mxu0 %v927_v8 }
 0x26d   :  { %v852_v15 = vpop.f32.mrb[0].mxu0 }
 0x26e   :  { %v656_v17 = vpop.f32.mrb[1].mxu0  ;;  %v665_v20 = vadd.f32 %v852_v15, %v507_v11  ;;  %v740_v11 = vpop.permute.xlu0 %739 }
 0x26f   :  { %v853_v19 = vpop.f32.mrb[2].mxu0  ;;  %v657_v23 = vadd.f32 %v656_v17, %v497_v47 }
 0x270   :  { %v668_v21 = vadd.f32 %v853_v19, %v512_v12  ;;  %v659_v22 = vpop.f32.mrb[3].mxu0 }
 0x271   :  { %v660_v50 = vadd.f32 %v659_v22, %v502_v10  ;;  %v735_v10 = vld [vmem:[#allocation11] sm:$0x3] }
 0x272   :  { %v720_v24 = vpack.c.bf16 %v668_v21, %v665_v20 }
 0x273   :  { %v719_v25 = vpack.c.bf16 %v660_v50, %v657_v23 }
 0x275   :  { %944 = vtanh.bf16 %v719_v25  ;;  %v856_v28 = vpop.f32.mrb[4].mxu0 }
 0x276   :  { %v672_v29 = vpop.f32.mrb[5].mxu0  ;;  %v681_v31 = vadd.f32 %v856_v28, %v527_v16  ;;  %946 = vtanh.bf16 %v720_v24 }
 0x277   :  { %v857_v30 = vpop.f32.mrb[6].mxu0  ;;  %v673_v34 = vadd.f32 %v672_v29, %v517_v13 }
 0x278   :  { %v684_v32 = vadd.f32 %v857_v30, %v532_v18  ;;  %v675_v33 = vpop.f32.mrb[7].mxu0 }
 0x279   :  { %v676_v35 = vadd.f32 %v675_v33, %v522_v14 }
 0x27a   :  { %v722_v37 = vpack.c.bf16 %v684_v32, %v681_v31 }
 0x27b   :  { %v721_v39 = vpack.c.bf16 %v676_v35, %v673_v34 }
 0x27d   :  { %948 = vtanh.bf16 %v721_v39  ;;  %v860_v40 = vpop.f32.mrb[8].mxu0 }
 0x27e   :  { %v688_v53 = vpop.f32.mrb[9].mxu0  ;;  %v697_v44 = vadd.f32 %v860_v40, %v547_v36  ;;  %950 = vtanh.bf16 %v722_v37 }
 0x27f   :  { %v861_v41 = vpop.f32.mrb[10].mxu0  ;;  %v689_v51 = vadd.f32 %v688_v53, %v537_v26 }
 0x280   :  { %v945_v42 = vpop.eup %944  ;;  %v700_v46 = vadd.f32 %v861_v41, %v552_v38  ;;  %v691_v48 = vpop.f32.mrb[11].mxu0 }
 0x281   :  { %v692_v52 = vadd.f32 %v691_v48, %v542_v27  ;;  %867 = vmatpush3.bf16.msra.mxu1 %v945_v42  ;;  %v947_v55 = vpop.eup %946 }
 0x282   :  { %v724_v45 = vpack.c.bf16 %v700_v46, %v697_v44  ;;  %868 = vmatprep.subr.bf16.mxu1 %v1159_v9 }
 0x283   :  { %v723_v54 = vpack.c.bf16 %v692_v52, %v689_v51 }
 0x285   :  { %952 = vtanh.bf16 %v723_v54  ;;  %v864_v56 = vpop.f32.mrb[12].mxu0  ;;  %869 = vmatpush3.bf16.msra.mxu1 %v947_v55 }
 0x286   :  { %v704_v58 = vpop.f32.mrb[13].mxu0  ;;  %870 = vmatprep.subr.bf16.mxu1 %v1159_v9  ;;  %v713_v63 = vadd.f32 %v864_v56, %v567_v57  ;;  %954 = vtanh.bf16 %v724_v45 }
 0x287   :  { %v865_v60 = vpop.f32.mrb[14].mxu0  ;;  %v705_v2 = vadd.f32 %v704_v58, %v557_v43 }
 0x288   :  { %v949_v62 = vpop.eup %948  ;;  %v716_v0 = vadd.f32 %v865_v60, %v572_v59  ;;  %v707_v1 = vpop.f32.mrb[15].mxu0 }
 0x289   :  { %v708_v3 = vadd.f32 %v707_v1, %v562_v49  ;;  %871 = vmatpush3.bf16.msra.mxu1 %v949_v62  ;;  %v951_v6 = vpop.eup %950 }
 0x28a   :  { %v726_v4 = vpack.c.bf16 %v716_v0, %v713_v63  ;;  %872 = vmatprep.subr.bf16.mxu1 %v1159_v9 }
 0x28b   :  { %v725_v61 = vpack.c.bf16 %v708_v3, %v705_v2 }
 0x28d   :  { %956 = vtanh.bf16 %v725_v61  ;;  %873 = vmatpush3.bf16.msra.mxu1 %v951_v6 }
 0x28e   :  { %874 = vmatprep.subr.bf16.mxu1 %v1159_v9  ;;  %958 = vtanh.bf16 %v726_v4 }
 0x290   :  { %v953_v7 = vpop.eup %952 }
 0x291   :  { %875 = vmatpush3.bf16.msra.mxu1 %v953_v7  ;;  %v955_v5 = vpop.eup %954 }
 0x292   :  { %876 = vmatprep.subr.bf16.mxu1 %v1159_v9 }
 0x295   :  { %877 = vmatpush3.bf16.msra.mxu1 %v955_v5 }
 0x296   :  { %878 = vmatprep.subr.bf16.mxu1 %v1159_v9 }
 0x298   :  { %v957_v8 = vpop.eup %956 }
 0x299   :  { %879 = vmatpush3.bf16.msra.mxu1 %v957_v8  ;;  %v959_v47 = vpop.eup %958 }
 0x29a   :  { %880 = vmatprep.subr.bf16.mxu1 %v1159_v9 }
 0x29d   :  { %881 = vmatpush3.bf16.msra.mxu1 %v959_v47 }
 0x2a0   :  { %883 = vmatmul.mubr.bf16.vlgmr.msra.gmra.mrb[0].mxu1 %v735_v10 }
 0x373   :  { %v776_v12 = vpop.f32.mrb[0].mxu1 }
 0x374   :  { %v777_v13 = vadd.f32 %v776_v12, %v740_v11  ;;  %v884_v14 = vpop.f32.mrb[1].mxu1 }
 0x375   :  { %v779_v15 = vpop.f32.mrb[2].mxu1 }
 0x376   :  { %782 = vst [vmem:[#allocation14] sm:$0x7] %v777_v13  ;;  %v885_v16 = vpop.f32.mrb[3].mxu1 }
 0x377   :  { %1125 = shalt.err (!%p1122_p4)
}
 0x378   :  { %s1126_s0 = scalar_lea.hbm %s1410_s7, 64 }
 0x379   :  { %p1127_p5 = scmp.ne.s32.totalorder %s1410_s7, %s1126_s0  ;;  %p1130_p6 = scmp.lt.u32.totalorder %s1126_s0, %s1410_s7 }
 0x37b   :  { %p1132_p7 = pnand %p1130_p6, %p1127_p5 }
 0x37d   :  { %1135 = shalt.err (!%p1132_p7)
}
 0x37e   :  { %792 = dma.vmem_to_hbm [thread:$0]  %s790_s12, 64, %s1410_s7, [#allocation4]  }
 0x37f   :  { %1144 = dma.done.wait [#allocation4], 64  }
 0x380   :  { %1145 = vsyncadd [#allocation4], 4294967232 }
 0x381   :  { %796 = vsyncpa [#allocation3], 1 }
 0x382   :  { %797 = vsyncpa [#allocation6], 1 }
 0x383   :  { %798 = vsyncpa [#allocation9], 1 }
 0x384   :  { %799 = vsyncpa [#allocation12], 1 }
 0x385   :  { %800 = vsyncpa [#allocation4], 1 }

</bundles_post_ra>
